<compile_context>
chip_gen: v6e
topology: v6e:2x2x1
jax: 0.10.0
libtpu: 0.0.40
codegen_flags: <defaults>
</compile_context>

<pallas_src>
import jax
import jax.numpy as jnp
from jax import lax
from jax.experimental import pallas as pl
from jax.experimental.pallas import tpu as pltpu


def _round_up(x, m):
    return ((x + m - 1) // m) * m


def _choose_grid(batch):
    # >= 2 grid steps so v7x's two TensorCores both get work (also gives the
    # pipeline something to overlap on v5e/v6e).  Tile capped at 256 rows.
    # TODO(synk): on v6e a 512-row tile amortizes MXU push/pop a bit better
    #   for very large batches.
    tb = min(256, max(8, _round_up(-(-batch // 2), 8)))
    n_tiles = max(2, -(-batch // tb))
    return tb, n_tiles


# ----------------------------------------------------------------------------
# Wrapper-side parameter packing (one slab, block-diagonal branch fusion)
# ----------------------------------------------------------------------------
def pack_asrec_params(params, emb_dim, gemini_dim, param_dtype=jnp.bfloat16):
    """Packs every Linear into one (rows, H) slab.

    Per MXU block l (row offset l*BR, BR = H + 16, 16-aligned for bf16 packing):
      rows [0, H) : weight (input rows x output cols), block-diagonal for the
                    fused user/biz + review stages, zero padded to (H, H)
      row  H      : bias row (zero padded)
    Head block (row offset n_mxu*BR, 16 rows):
      row 0 : head weight as a row vector (zero padded to H)
      row 8 : head bias at column 0
    """
    L_ub = params["ub_mlp"]
    L_rv = params["rev_mlp"]
    L_fn = params["final_mlp"][:-1]
    head_w, head_b = params["final_mlp"][-1]

    if (len(L_ub) == 0) != (len(L_rv) == 0):
        # TODO(synk): identity padding of a 0-layer branch would ReLU raw
        # (possibly negative) inputs; needs a ReLU mask on identity columns.
        raise NotImplementedError(
            "ASRec Pallas kernel: one MLP branch empty while the other is not")

    n_stage = max(len(L_ub), len(L_rv))

    # --- pass 1: padded feature width H ------------------------------------
    dims = []
    ub_d, rv_d = 2 * emb_dim, gemini_dim
    dims.append(ub_d + rv_d)
    for s in range(n_stage):
        ub_d = L_ub[s][0].shape[1] if s < len(L_ub) else ub_d
        rv_d = L_rv[s][0].shape[1] if s < len(L_rv) else rv_d
        dims.append(ub_d + rv_d)
    for (w, _) in L_fn:
        dims.append(w.shape[0])
        dims.append(w.shape[1])
    dims.append(head_w.shape[0])
    H = max(128, _round_up(max(dims), 128))
    BR = H + 16

    # --- pass 2: build the packed blocks ------------------------------------
    blocks = []
    ub_d, rv_d = 2 * emb_dim, gemini_dim
    for s in range(n_stage):
        if s < len(L_ub):
            wu, bu = L_ub[s]
        else:
            # Identity padding is only reached when this branch has >= 1 ReLU
            # layer (guarded above), so its running activation is >= 0.
            wu = jnp.eye(ub_d, dtype=jnp.float32)
            bu = jnp.zeros((ub_d,), jnp.float32)
        if s < len(L_rv):
            wr, br = L_rv[s]
        else:
            wr = jnp.eye(rv_d, dtype=jnp.float32)
            br = jnp.zeros((rv_d,), jnp.float32)
        uo, ro = wu.shape[1], wr.shape[1]
        blk = jnp.zeros((BR, H), jnp.float32)
        blk = blk.at[0:ub_d, 0:uo].set(wu.astype(jnp.float32))
        blk = blk.at[ub_d:ub_d + rv_d, uo:uo + ro].set(wr.astype(jnp.float32))
        blk = blk.at[H, 0:uo].set(bu.astype(jnp.float32))
        blk = blk.at[H, uo:uo + ro].set(br.astype(jnp.float32))
        blocks.append(blk)
        ub_d, rv_d = uo, ro

    for (w, b) in L_fn:
        kin, kout = w.shape
        blk = jnp.zeros((BR, H), jnp.float32)
        blk = blk.at[0:kin, 0:kout].set(w.astype(jnp.float32))
        blk = blk.at[H, 0:kout].set(b.astype(jnp.float32))
        blocks.append(blk)

    n_mxu = len(blocks)
    if n_mxu == 0:
        # TODO(synk): degenerate config (all three MLP dim lists empty) would
        # need the head to consume the raw split inputs; not implemented.
        raise NotImplementedError("ASRec Pallas kernel needs >= 1 hidden Linear")

    hblk = jnp.zeros((16, H), jnp.float32)
    hblk = hblk.at[0, 0:head_w.shape[0]].set(head_w[:, 0].astype(jnp.float32))
    hblk = hblk.at[8, 0].set(head_b[0].astype(jnp.float32))
    blocks.append(hblk)

    pslab = jnp.concatenate(blocks, axis=0).astype(param_dtype)
    return pslab, n_mxu, H, BR


# ----------------------------------------------------------------------------
# Kernel
# ----------------------------------------------------------------------------
def make_asrec_kernel(tb, emb_dim, gemini_dim, h_pad, n_mxu, br, cdt):
    e, g, H, BR = emb_dim, gemini_dim, h_pad, br

    def kernel(uid_ref, bid_ref,            # scalar-prefetched ids (SMEM)
               rev_ref,                     # (tb, G) review embeddings (VMEM)
               uemb_hbm, bemb_hbm,          # embedding tables (HBM / ANY)
               p_ref,                       # packed parameter slab (VMEM)
               out_ref,                     # (8, tb) lane-dense predictions
               ubuf, bbuf, dsem):           # scratch: gathered rows + DMA sems
        base = pl.program_id(0) * tb

        # ---- issue embedding-row gather DMAs (user + business) -------------
        def issue(i, carry):
            uid = uid_ref[base + i]
            bid = bid_ref[base + i]
            pltpu.make_async_copy(uemb_hbm.at[pl.ds(uid, 1)],
                                  ubuf.at[pl.ds(i, 1)], dsem.at[0]).start()
            pltpu.make_async_copy(bemb_hbm.at[pl.ds(bid, 1)],
                                  bbuf.at[pl.ds(i, 1)], dsem.at[1]).start()
            return carry

        lax.fori_loop(0, tb, issue, 0, unroll=min(8, tb))

        # ---- fused layer 0, review branch: overlaps the gather DMAs --------
        acc = jnp.dot(rev_ref[...].astype(cdt), p_ref[2 * e:2 * e + g, :],
                      preferred_element_type=jnp.float32)
        acc = acc + p_ref[H:H + 1, :].astype(jnp.float32)

        # ---- one aggregate wait per buffer (covers ALL tb rows) ------------
        pltpu.make_async_copy(ubuf, ubuf, dsem.at[0]).wait()
        pltpu.make_async_copy(bbuf, bbuf, dsem.at[1]).wait()

        # ---- fused layer 0, user/biz branch: single K=2e MXU pass ----------
        ub = jnp.concatenate([ubuf[...], bbuf[...]], axis=-1).astype(cdt)
        acc = acc + jnp.dot(ub, p_ref[0:2 * e, :],
                            preferred_element_type=jnp.float32)
        hid = jnp.maximum(acc, 0.0).astype(cdt)

        # ---- remaining packed MXU layers (fused stages + final MLP) --------
        for l in range(1, n_mxu):
            off = l * BR
            a = jnp.dot(hid, p_ref[off:off + H, :],
                        preferred_element_type=jnp.float32)
            a = a + p_ref[off + H:off + H + 1, :].astype(jnp.float32)
            hid = jnp.maximum(a, 0.0).astype(cdt)

        # ---- 1-wide prediction head on the VPU/XLU, lane-dense store -------
        hoff = n_mxu * BR
        w_head = p_ref[hoff:hoff + 1, :].astype(jnp.float32)        # (1, H)
        b_head = p_ref[hoff + 8:hoff + 9, 0:1].astype(jnp.float32)  # (1, 1)
        scores = jnp.sum(hid.astype(jnp.float32) * w_head, axis=-1)  # (tb,)
        row = scores[None, :] + b_head                               # (1, tb)
        out_ref[...] = jnp.broadcast_to(row, (8, tb))

    return kernel


# ----------------------------------------------------------------------------
# Forward wrapper
# ----------------------------------------------------------------------------
def asrec_forward(params, user_ids, business_ids, embeddings, *, use_bf16=True):
    emb_dim = params["user_emb"].shape[1]
    gemini_dim = embeddings.shape[1]
    batch = user_ids.shape[0]

    if use_bf16 and (2 * emb_dim) % 8 != 0:
        # TODO(synk): odd embedding widths would slice the bf16 slab at a
        # misaligned sublane offset; fall back to f32 weights.
        use_bf16 = False
    param_dtype = jnp.bfloat16 if use_bf16 else jnp.float32

    pslab, n_mxu, h_pad, br = pack_asrec_params(params, emb_dim, gemini_dim,
                                                param_dtype)

    tb, n_tiles = _choose_grid(batch)
    b_pad = tb * n_tiles

    uid = jnp.zeros((b_pad,), jnp.int32).at[:batch].set(user_ids.astype(jnp.int32))
    bid = jnp.zeros((b_pad,), jnp.int32).at[:batch].set(business_ids.astype(jnp.int32))
    rev = jnp.zeros((b_pad, gemini_dim), jnp.float32).at[:batch].set(
        embeddings.astype(jnp.float32))

    kernel = make_asrec_kernel(tb, emb_dim, gemini_dim, h_pad, n_mxu, br,
                               pslab.dtype)

    grid_spec = pltpu.PrefetchScalarGridSpec(
        num_scalar_prefetch=2,
        grid=(n_tiles,),
        in_specs=[
            pl.BlockSpec((tb, gemini_dim), lambda t, u, b: (t, 0)),  # review emb
            pl.BlockSpec(memory_space=pl.ANY),                       # user table
            pl.BlockSpec(memory_space=pl.ANY),                       # business table
            pl.BlockSpec(pslab.shape, lambda t, u, b: (0, 0)),       # packed params
        ],
        # lane-dense output: each tile writes an (8, tb) row block
        out_specs=pl.BlockSpec((8, tb), lambda t, u, b: (t, 0)),
        scratch_shapes=[
            pltpu.VMEM((tb, emb_dim), jnp.float32),   # gathered user rows
            pltpu.VMEM((tb, emb_dim), jnp.float32),   # gathered business rows
            pltpu.SemaphoreType.DMA((2,)),
        ],
    )

    out = pl.pallas_call(
        kernel,
        out_shape=jax.ShapeDtypeStruct((n_tiles * 8, tb), jnp.float32),
        grid_spec=grid_spec,
        compiler_params=pltpu.CompilerParams(
            dimension_semantics=("parallel",),
            vmem_limit_bytes=32 * 1024 * 1024),
    )(uid, bid, rev,
      params["user_emb"].astype(jnp.float32),
      params["biz_emb"].astype(jnp.float32),
      pslab)

    # sublane 0 of each (8, tb) tile row-block holds the scores
    flat = out.reshape(n_tiles, 8, tb)[:, 0, :].reshape(-1)
    return jnp.squeeze(flat[:batch])


# ----------------------------------------------------------------------------
# Deterministic parameter construction (mirrors the nn.Module __init__ shapes)
# ----------------------------------------------------------------------------
def init_params(key, num_users, num_businesses, embedding_dim,
                user_biz_mlp_dims, review_mlp_dims, final_mlp_dims,
                gemini_embedding_dim):
    counter = [0]

    def next_key():
        counter[0] += 1
        return jax.random.fold_in(key, counter[0])

    def dense(kin, kout):
        scale = 1.0 / float(kin) ** 0.5
        w = jax.random.uniform(next_key(), (kin, kout),
                               minval=-scale, maxval=scale, dtype=jnp.float32)
        b = jax.random.uniform(next_key(), (kout,),
                               minval=-scale, maxval=scale, dtype=jnp.float32)
        return (w, b)   # stored pre-transposed: (in, out)

    params = {
        "user_emb": jax.random.normal(next_key(),
                                      (num_users, embedding_dim), jnp.float32),
        "biz_emb": jax.random.normal(next_key(),
                                     (num_businesses, embedding_dim), jnp.float32),
    }

    ub_mlp, d = [], embedding_dim * 2
    for dim in user_biz_mlp_dims:
        ub_mlp.append(dense(d, dim))
        d = dim
    ub_out = user_biz_mlp_dims[-1] if user_biz_mlp_dims else embedding_dim * 2

    rev_mlp, d = [], gemini_embedding_dim
    for dim in review_mlp_dims:
        rev_mlp.append(dense(d, dim))
        d = dim
    rev_out = review_mlp_dims[-1] if review_mlp_dims else gemini_embedding_dim

    final_mlp, d = [], ub_out + rev_out
    for dim in final_mlp_dims:
        final_mlp.append(dense(d, dim))
        d = dim
    final_mlp.append(dense(d, 1))

    params["ub_mlp"] = ub_mlp
    params["rev_mlp"] = rev_mlp
    params["final_mlp"] = final_mlp
    return params


# Pure-JAX reference for correctness check.
def asrec_reference(params, user_ids, business_ids, embeddings):
    x = jnp.concatenate([params["user_emb"][user_ids],
                         params["biz_emb"][business_ids]], axis=1)
    for w, b in params["ub_mlp"]:
        x = jnp.maximum(x @ w + b, 0.0)
    r = embeddings
    for w, b in params["rev_mlp"]:
        r = jnp.maximum(r @ w + b, 0.0)
    h = jnp.concatenate([x, r], axis=1)
    for w, b in params["final_mlp"][:-1]:
        h = jnp.maximum(h @ w + b, 0.0)
    w, b = params["final_mlp"][-1]
    return (h @ w + b).squeeze()


# ----------------------------------------------------------------------------
if __name__ == "__main__":
    num_users = 50
    num_businesses = 60
    embedding_dim = 16
    gemini_embedding_dim = 32
    user_biz_mlp_dims = [32, 16]
    review_mlp_dims = [32, 16]
    final_mlp_dims = [32]
    batch = 8

    key = jax.random.PRNGKey(0)
    kp, ku, kb, ke = jax.random.split(key, 4)

    params = init_params(kp, num_users, num_businesses, embedding_dim,
                         user_biz_mlp_dims, review_mlp_dims, final_mlp_dims,
                         gemini_embedding_dim)

    user_ids = jax.random.randint(ku, (batch,), 0, num_users)
    business_ids = jax.random.randint(kb, (batch,), 0, num_businesses)
    embeddings = jax.random.normal(ke, (batch, gemini_embedding_dim), jnp.float32)

    ref = asrec_reference(params, user_ids, business_ids, embeddings)

    # exact f32 path: strict check
    out_f32 = jax.block_until_ready(
        asrec_forward(params, user_ids, business_ids, embeddings, use_bf16=False))
    assert out_f32.shape == ref.shape == (batch,)
    assert jnp.allclose(out_f32, ref, atol=1e-4, rtol=1e-4)

    # default bf16-weight path (v6e/v7x MXU-friendly): loose-tolerance check
    out_bf16 = jax.block_until_ready(
        asrec_forward(params, user_ids, business_ids, embeddings))
    assert out_bf16.shape == (batch,)
    assert jnp.allclose(out_bf16, ref, atol=5e-2, rtol=5e-2)

    print("KERNEL_OK")
</pallas_src>

<mosaic_0001>
module attributes {stable_mosaic.version = 11 : i64} {
  func.func @kernel(%arg0: i32, %arg1: memref<16xi32, #tpu.memory_space<smem>>, %arg2: memref<16xi32, #tpu.memory_space<smem>>, %arg3: memref<8x32xf32, #tpu.memory_space<vmem>>, %arg4: memref<50x16xf32, #tpu.memory_space<any>>, %arg5: memref<60x16xf32, #tpu.memory_space<any>>, %arg6: memref<448x128xf32, #tpu.memory_space<vmem>>, %arg7: memref<8x8xf32, #tpu.memory_space<vmem>>, %arg8: memref<8x16xf32, #tpu.memory_space<vmem>>, %arg9: memref<8x16xf32, #tpu.memory_space<vmem>>, %arg10: memref<2x!tpu.dma_semaphore, #tpu.memory_space<semaphore_mem>>) attributes {dimension_semantics = [#tpu.dimension_semantics<parallel>], iteration_bounds = array<i64: 2>, scalar_prefetch = 2 : i64, scratch_operands = 3 : i64, tpu.core_type = #tpu.core_type<tc>, window_params = [{transform_indices = @transform_0, window_bounds = array<i64: 8, 32>}, {}, {}, {pipeline_mode = #tpu.pipeline_mode<synchronous>, transform_indices = @transform_3, window_bounds = array<i64: 448, 128>}, {transform_indices = @transform_4, window_bounds = array<i64: 8, 8>}]} {
    %c8_i32 = arith.constant 8 : i32
    %0 = arith.muli %arg0, %c8_i32 : i32
    %c0_i32 = arith.constant 0 : i32
    %1 = arith.addi %0, %c0_i32 : i32
    %2 = arith.index_cast %1 : i32 to index
    %3 = memref.load %arg1[%2] : memref<16xi32, #tpu.memory_space<smem>>
    %4 = arith.addi %0, %c0_i32 : i32
    %5 = arith.index_cast %4 : i32 to index
    %6 = memref.load %arg2[%5] : memref<16xi32, #tpu.memory_space<smem>>
    %c0_i32_0 = arith.constant 0 : i32
    %c0_i32_1 = arith.constant 0 : i32
    %7 = tpu.memref_slice %arg4[%3, %c0_i32_1] : memref<50x16xf32, #tpu.memory_space<any>> -> memref<1x16xf32, #tpu.memory_space<any>>
    %c0_i32_2 = arith.constant 0 : i32
    %8 = tpu.memref_slice %arg8[%c0_i32, %c0_i32_2] : memref<8x16xf32, #tpu.memory_space<vmem>> -> memref<1x16xf32, #tpu.memory_space<vmem>>
    %9 = tpu.memref_slice %arg10[%c0_i32_0] : memref<2x!tpu.dma_semaphore, #tpu.memory_space<semaphore_mem>> -> memref<1x!tpu.dma_semaphore, #tpu.memory_space<semaphore_mem>>
    %10 = tpu.memref_squeeze %9 : memref<1x!tpu.dma_semaphore, #tpu.memory_space<semaphore_mem>> -> memref<!tpu.dma_semaphore, #tpu.memory_space<semaphore_mem>>
    tpu.enqueue_dma source(%7 : memref<1x16xf32, #tpu.memory_space<any>>) target(%8 : memref<1x16xf32, #tpu.memory_space<vmem>>) target_semaphore(%10 : memref<!tpu.dma_semaphore, #tpu.memory_space<semaphore_mem>>)
    %c1_i32 = arith.constant 1 : i32
    %c0_i32_3 = arith.constant 0 : i32
    %11 = tpu.memref_slice %arg5[%6, %c0_i32_3] : memref<60x16xf32, #tpu.memory_space<any>> -> memref<1x16xf32, #tpu.memory_space<any>>
    %c0_i32_4 = arith.constant 0 : i32
    %12 = tpu.memref_slice %arg9[%c0_i32, %c0_i32_4] : memref<8x16xf32, #tpu.memory_space<vmem>> -> memref<1x16xf32, #tpu.memory_space<vmem>>
    %13 = tpu.memref_slice %arg10[%c1_i32] : memref<2x!tpu.dma_semaphore, #tpu.memory_space<semaphore_mem>> -> memref<1x!tpu.dma_semaphore, #tpu.memory_space<semaphore_mem>>
    %14 = tpu.memref_squeeze %13 : memref<1x!tpu.dma_semaphore, #tpu.memory_space<semaphore_mem>> -> memref<!tpu.dma_semaphore, #tpu.memory_space<semaphore_mem>>
    tpu.enqueue_dma source(%11 : memref<1x16xf32, #tpu.memory_space<any>>) target(%12 : memref<1x16xf32, #tpu.memory_space<vmem>>) target_semaphore(%14 : memref<!tpu.dma_semaphore, #tpu.memory_space<semaphore_mem>>)
    %c1_i32_5 = arith.constant 1 : i32
    %15 = arith.addi %0, %c1_i32_5 : i32
    %16 = arith.index_cast %15 : i32 to index
    %17 = memref.load %arg1[%16] : memref<16xi32, #tpu.memory_space<smem>>
    %18 = arith.addi %0, %c1_i32_5 : i32
    %19 = arith.index_cast %18 : i32 to index
    %20 = memref.load %arg2[%19] : memref<16xi32, #tpu.memory_space<smem>>
    %c0_i32_6 = arith.constant 0 : i32
    %c0_i32_7 = arith.constant 0 : i32
    %21 = tpu.memref_slice %arg4[%17, %c0_i32_7] : memref<50x16xf32, #tpu.memory_space<any>> -> memref<1x16xf32, #tpu.memory_space<any>>
    %c0_i32_8 = arith.constant 0 : i32
    %22 = tpu.memref_slice %arg8[%c1_i32_5, %c0_i32_8] : memref<8x16xf32, #tpu.memory_space<vmem>> -> memref<1x16xf32, #tpu.memory_space<vmem>>
    %23 = tpu.memref_slice %arg10[%c0_i32_6] : memref<2x!tpu.dma_semaphore, #tpu.memory_space<semaphore_mem>> -> memref<1x!tpu.dma_semaphore, #tpu.memory_space<semaphore_mem>>
    %24 = tpu.memref_squeeze %23 : memref<1x!tpu.dma_semaphore, #tpu.memory_space<semaphore_mem>> -> memref<!tpu.dma_semaphore, #tpu.memory_space<semaphore_mem>>
    tpu.enqueue_dma source(%21 : memref<1x16xf32, #tpu.memory_space<any>>) target(%22 : memref<1x16xf32, #tpu.memory_space<vmem>>) target_semaphore(%24 : memref<!tpu.dma_semaphore, #tpu.memory_space<semaphore_mem>>)
    %c1_i32_9 = arith.constant 1 : i32
    %c0_i32_10 = arith.constant 0 : i32
    %25 = tpu.memref_slice %arg5[%20, %c0_i32_10] : memref<60x16xf32, #tpu.memory_space<any>> -> memref<1x16xf32, #tpu.memory_space<any>>
    %c0_i32_11 = arith.constant 0 : i32
    %26 = tpu.memref_slice %arg9[%c1_i32_5, %c0_i32_11] : memref<8x16xf32, #tpu.memory_space<vmem>> -> memref<1x16xf32, #tpu.memory_space<vmem>>
    %27 = tpu.memref_slice %arg10[%c1_i32_9] : memref<2x!tpu.dma_semaphore, #tpu.memory_space<semaphore_mem>> -> memref<1x!tpu.dma_semaphore, #tpu.memory_space<semaphore_mem>>
    %28 = tpu.memref_squeeze %27 : memref<1x!tpu.dma_semaphore, #tpu.memory_space<semaphore_mem>> -> memref<!tpu.dma_semaphore, #tpu.memory_space<semaphore_mem>>
    tpu.enqueue_dma source(%25 : memref<1x16xf32, #tpu.memory_space<any>>) target(%26 : memref<1x16xf32, #tpu.memory_space<vmem>>) target_semaphore(%28 : memref<!tpu.dma_semaphore, #tpu.memory_space<semaphore_mem>>)
    %c2_i32 = arith.constant 2 : i32
    %29 = arith.addi %0, %c2_i32 : i32
    %30 = arith.index_cast %29 : i32 to index
    %31 = memref.load %arg1[%30] : memref<16xi32, #tpu.memory_space<smem>>
    %32 = arith.addi %0, %c2_i32 : i32
    %33 = arith.index_cast %32 : i32 to index
    %34 = memref.load %arg2[%33] : memref<16xi32, #tpu.memory_space<smem>>
    %c0_i32_12 = arith.constant 0 : i32
    %c0_i32_13 = arith.constant 0 : i32
    %35 = tpu.memref_slice %arg4[%31, %c0_i32_13] : memref<50x16xf32, #tpu.memory_space<any>> -> memref<1x16xf32, #tpu.memory_space<any>>
    %c0_i32_14 = arith.constant 0 : i32
    %36 = tpu.memref_slice %arg8[%c2_i32, %c0_i32_14] : memref<8x16xf32, #tpu.memory_space<vmem>> -> memref<1x16xf32, #tpu.memory_space<vmem>>
    %37 = tpu.memref_slice %arg10[%c0_i32_12] : memref<2x!tpu.dma_semaphore, #tpu.memory_space<semaphore_mem>> -> memref<1x!tpu.dma_semaphore, #tpu.memory_space<semaphore_mem>>
    %38 = tpu.memref_squeeze %37 : memref<1x!tpu.dma_semaphore, #tpu.memory_space<semaphore_mem>> -> memref<!tpu.dma_semaphore, #tpu.memory_space<semaphore_mem>>
    tpu.enqueue_dma source(%35 : memref<1x16xf32, #tpu.memory_space<any>>) target(%36 : memref<1x16xf32, #tpu.memory_space<vmem>>) target_semaphore(%38 : memref<!tpu.dma_semaphore, #tpu.memory_space<semaphore_mem>>)
    %c1_i32_15 = arith.constant 1 : i32
    %c0_i32_16 = arith.constant 0 : i32
    %39 = tpu.memref_slice %arg5[%34, %c0_i32_16] : memref<60x16xf32, #tpu.memory_space<any>> -> memref<1x16xf32, #tpu.memory_space<any>>
    %c0_i32_17 = arith.constant 0 : i32
    %40 = tpu.memref_slice %arg9[%c2_i32, %c0_i32_17] : memref<8x16xf32, #tpu.memory_space<vmem>> -> memref<1x16xf32, #tpu.memory_space<vmem>>
    %41 = tpu.memref_slice %arg10[%c1_i32_15] : memref<2x!tpu.dma_semaphore, #tpu.memory_space<semaphore_mem>> -> memref<1x!tpu.dma_semaphore, #tpu.memory_space<semaphore_mem>>
    %42 = tpu.memref_squeeze %41 : memref<1x!tpu.dma_semaphore, #tpu.memory_space<semaphore_mem>> -> memref<!tpu.dma_semaphore, #tpu.memory_space<semaphore_mem>>
    tpu.enqueue_dma source(%39 : memref<1x16xf32, #tpu.memory_space<any>>) target(%40 : memref<1x16xf32, #tpu.memory_space<vmem>>) target_semaphore(%42 : memref<!tpu.dma_semaphore, #tpu.memory_space<semaphore_mem>>)
    %c3_i32 = arith.constant 3 : i32
    %43 = arith.addi %0, %c3_i32 : i32
    %44 = arith.index_cast %43 : i32 to index
    %45 = memref.load %arg1[%44] : memref<16xi32, #tpu.memory_space<smem>>
    %46 = arith.addi %0, %c3_i32 : i32
    %47 = arith.index_cast %46 : i32 to index
    %48 = memref.load %arg2[%47] : memref<16xi32, #tpu.memory_space<smem>>
    %c0_i32_18 = arith.constant 0 : i32
    %c0_i32_19 = arith.constant 0 : i32
    %49 = tpu.memref_slice %arg4[%45, %c0_i32_19] : memref<50x16xf32, #tpu.memory_space<any>> -> memref<1x16xf32, #tpu.memory_space<any>>
    %c0_i32_20 = arith.constant 0 : i32
    %50 = tpu.memref_slice %arg8[%c3_i32, %c0_i32_20] : memref<8x16xf32, #tpu.memory_space<vmem>> -> memref<1x16xf32, #tpu.memory_space<vmem>>
    %51 = tpu.memref_slice %arg10[%c0_i32_18] : memref<2x!tpu.dma_semaphore, #tpu.memory_space<semaphore_mem>> -> memref<1x!tpu.dma_semaphore, #tpu.memory_space<semaphore_mem>>
    %52 = tpu.memref_squeeze %51 : memref<1x!tpu.dma_semaphore, #tpu.memory_space<semaphore_mem>> -> memref<!tpu.dma_semaphore, #tpu.memory_space<semaphore_mem>>
    tpu.enqueue_dma source(%49 : memref<1x16xf32, #tpu.memory_space<any>>) target(%50 : memref<1x16xf32, #tpu.memory_space<vmem>>) target_semaphore(%52 : memref<!tpu.dma_semaphore, #tpu.memory_space<semaphore_mem>>)
    %c1_i32_21 = arith.constant 1 : i32
    %c0_i32_22 = arith.constant 0 : i32
    %53 = tpu.memref_slice %arg5[%48, %c0_i32_22] : memref<60x16xf32, #tpu.memory_space<any>> -> memref<1x16xf32, #tpu.memory_space<any>>
    %c0_i32_23 = arith.constant 0 : i32
    %54 = tpu.memref_slice %arg9[%c3_i32, %c0_i32_23] : memref<8x16xf32, #tpu.memory_space<vmem>> -> memref<1x16xf32, #tpu.memory_space<vmem>>
    %55 = tpu.memref_slice %arg10[%c1_i32_21] : memref<2x!tpu.dma_semaphore, #tpu.memory_space<semaphore_mem>> -> memref<1x!tpu.dma_semaphore, #tpu.memory_space<semaphore_mem>>
    %56 = tpu.memref_squeeze %55 : memref<1x!tpu.dma_semaphore, #tpu.memory_space<semaphore_mem>> -> memref<!tpu.dma_semaphore, #tpu.memory_space<semaphore_mem>>
    tpu.enqueue_dma source(%53 : memref<1x16xf32, #tpu.memory_space<any>>) target(%54 : memref<1x16xf32, #tpu.memory_space<vmem>>) target_semaphore(%56 : memref<!tpu.dma_semaphore, #tpu.memory_space<semaphore_mem>>)
    %c4_i32 = arith.constant 4 : i32
    %57 = arith.addi %0, %c4_i32 : i32
    %58 = arith.index_cast %57 : i32 to index
    %59 = memref.load %arg1[%58] : memref<16xi32, #tpu.memory_space<smem>>
    %60 = arith.addi %0, %c4_i32 : i32
    %61 = arith.index_cast %60 : i32 to index
    %62 = memref.load %arg2[%61] : memref<16xi32, #tpu.memory_space<smem>>
    %c0_i32_24 = arith.constant 0 : i32
    %c0_i32_25 = arith.constant 0 : i32
    %63 = tpu.memref_slice %arg4[%59, %c0_i32_25] : memref<50x16xf32, #tpu.memory_space<any>> -> memref<1x16xf32, #tpu.memory_space<any>>
    %c0_i32_26 = arith.constant 0 : i32
    %64 = tpu.memref_slice %arg8[%c4_i32, %c0_i32_26] : memref<8x16xf32, #tpu.memory_space<vmem>> -> memref<1x16xf32, #tpu.memory_space<vmem>>
    %65 = tpu.memref_slice %arg10[%c0_i32_24] : memref<2x!tpu.dma_semaphore, #tpu.memory_space<semaphore_mem>> -> memref<1x!tpu.dma_semaphore, #tpu.memory_space<semaphore_mem>>
    %66 = tpu.memref_squeeze %65 : memref<1x!tpu.dma_semaphore, #tpu.memory_space<semaphore_mem>> -> memref<!tpu.dma_semaphore, #tpu.memory_space<semaphore_mem>>
    tpu.enqueue_dma source(%63 : memref<1x16xf32, #tpu.memory_space<any>>) target(%64 : memref<1x16xf32, #tpu.memory_space<vmem>>) target_semaphore(%66 : memref<!tpu.dma_semaphore, #tpu.memory_space<semaphore_mem>>)
    %c1_i32_27 = arith.constant 1 : i32
    %c0_i32_28 = arith.constant 0 : i32
    %67 = tpu.memref_slice %arg5[%62, %c0_i32_28] : memref<60x16xf32, #tpu.memory_space<any>> -> memref<1x16xf32, #tpu.memory_space<any>>
    %c0_i32_29 = arith.constant 0 : i32
    %68 = tpu.memref_slice %arg9[%c4_i32, %c0_i32_29] : memref<8x16xf32, #tpu.memory_space<vmem>> -> memref<1x16xf32, #tpu.memory_space<vmem>>
    %69 = tpu.memref_slice %arg10[%c1_i32_27] : memref<2x!tpu.dma_semaphore, #tpu.memory_space<semaphore_mem>> -> memref<1x!tpu.dma_semaphore, #tpu.memory_space<semaphore_mem>>
    %70 = tpu.memref_squeeze %69 : memref<1x!tpu.dma_semaphore, #tpu.memory_space<semaphore_mem>> -> memref<!tpu.dma_semaphore, #tpu.memory_space<semaphore_mem>>
    tpu.enqueue_dma source(%67 : memref<1x16xf32, #tpu.memory_space<any>>) target(%68 : memref<1x16xf32, #tpu.memory_space<vmem>>) target_semaphore(%70 : memref<!tpu.dma_semaphore, #tpu.memory_space<semaphore_mem>>)
    %c5_i32 = arith.constant 5 : i32
    %71 = arith.addi %0, %c5_i32 : i32
    %72 = arith.index_cast %71 : i32 to index
    %73 = memref.load %arg1[%72] : memref<16xi32, #tpu.memory_space<smem>>
    %74 = arith.addi %0, %c5_i32 : i32
    %75 = arith.index_cast %74 : i32 to index
    %76 = memref.load %arg2[%75] : memref<16xi32, #tpu.memory_space<smem>>
    %c0_i32_30 = arith.constant 0 : i32
    %c0_i32_31 = arith.constant 0 : i32
    %77 = tpu.memref_slice %arg4[%73, %c0_i32_31] : memref<50x16xf32, #tpu.memory_space<any>> -> memref<1x16xf32, #tpu.memory_space<any>>
    %c0_i32_32 = arith.constant 0 : i32
    %78 = tpu.memref_slice %arg8[%c5_i32, %c0_i32_32] : memref<8x16xf32, #tpu.memory_space<vmem>> -> memref<1x16xf32, #tpu.memory_space<vmem>>
    %79 = tpu.memref_slice %arg10[%c0_i32_30] : memref<2x!tpu.dma_semaphore, #tpu.memory_space<semaphore_mem>> -> memref<1x!tpu.dma_semaphore, #tpu.memory_space<semaphore_mem>>
    %80 = tpu.memref_squeeze %79 : memref<1x!tpu.dma_semaphore, #tpu.memory_space<semaphore_mem>> -> memref<!tpu.dma_semaphore, #tpu.memory_space<semaphore_mem>>
    tpu.enqueue_dma source(%77 : memref<1x16xf32, #tpu.memory_space<any>>) target(%78 : memref<1x16xf32, #tpu.memory_space<vmem>>) target_semaphore(%80 : memref<!tpu.dma_semaphore, #tpu.memory_space<semaphore_mem>>)
    %c1_i32_33 = arith.constant 1 : i32
    %c0_i32_34 = arith.constant 0 : i32
    %81 = tpu.memref_slice %arg5[%76, %c0_i32_34] : memref<60x16xf32, #tpu.memory_space<any>> -> memref<1x16xf32, #tpu.memory_space<any>>
    %c0_i32_35 = arith.constant 0 : i32
    %82 = tpu.memref_slice %arg9[%c5_i32, %c0_i32_35] : memref<8x16xf32, #tpu.memory_space<vmem>> -> memref<1x16xf32, #tpu.memory_space<vmem>>
    %83 = tpu.memref_slice %arg10[%c1_i32_33] : memref<2x!tpu.dma_semaphore, #tpu.memory_space<semaphore_mem>> -> memref<1x!tpu.dma_semaphore, #tpu.memory_space<semaphore_mem>>
    %84 = tpu.memref_squeeze %83 : memref<1x!tpu.dma_semaphore, #tpu.memory_space<semaphore_mem>> -> memref<!tpu.dma_semaphore, #tpu.memory_space<semaphore_mem>>
    tpu.enqueue_dma source(%81 : memref<1x16xf32, #tpu.memory_space<any>>) target(%82 : memref<1x16xf32, #tpu.memory_space<vmem>>) target_semaphore(%84 : memref<!tpu.dma_semaphore, #tpu.memory_space<semaphore_mem>>)
    %c6_i32 = arith.constant 6 : i32
    %85 = arith.addi %0, %c6_i32 : i32
    %86 = arith.index_cast %85 : i32 to index
    %87 = memref.load %arg1[%86] : memref<16xi32, #tpu.memory_space<smem>>
    %88 = arith.addi %0, %c6_i32 : i32
    %89 = arith.index_cast %88 : i32 to index
    %90 = memref.load %arg2[%89] : memref<16xi32, #tpu.memory_space<smem>>
    %c0_i32_36 = arith.constant 0 : i32
    %c0_i32_37 = arith.constant 0 : i32
    %91 = tpu.memref_slice %arg4[%87, %c0_i32_37] : memref<50x16xf32, #tpu.memory_space<any>> -> memref<1x16xf32, #tpu.memory_space<any>>
    %c0_i32_38 = arith.constant 0 : i32
    %92 = tpu.memref_slice %arg8[%c6_i32, %c0_i32_38] : memref<8x16xf32, #tpu.memory_space<vmem>> -> memref<1x16xf32, #tpu.memory_space<vmem>>
    %93 = tpu.memref_slice %arg10[%c0_i32_36] : memref<2x!tpu.dma_semaphore, #tpu.memory_space<semaphore_mem>> -> memref<1x!tpu.dma_semaphore, #tpu.memory_space<semaphore_mem>>
    %94 = tpu.memref_squeeze %93 : memref<1x!tpu.dma_semaphore, #tpu.memory_space<semaphore_mem>> -> memref<!tpu.dma_semaphore, #tpu.memory_space<semaphore_mem>>
    tpu.enqueue_dma source(%91 : memref<1x16xf32, #tpu.memory_space<any>>) target(%92 : memref<1x16xf32, #tpu.memory_space<vmem>>) target_semaphore(%94 : memref<!tpu.dma_semaphore, #tpu.memory_space<semaphore_mem>>)
    %c1_i32_39 = arith.constant 1 : i32
    %c0_i32_40 = arith.constant 0 : i32
    %95 = tpu.memref_slice %arg5[%90, %c0_i32_40] : memref<60x16xf32, #tpu.memory_space<any>> -> memref<1x16xf32, #tpu.memory_space<any>>
    %c0_i32_41 = arith.constant 0 : i32
    %96 = tpu.memref_slice %arg9[%c6_i32, %c0_i32_41] : memref<8x16xf32, #tpu.memory_space<vmem>> -> memref<1x16xf32, #tpu.memory_space<vmem>>
    %97 = tpu.memref_slice %arg10[%c1_i32_39] : memref<2x!tpu.dma_semaphore, #tpu.memory_space<semaphore_mem>> -> memref<1x!tpu.dma_semaphore, #tpu.memory_space<semaphore_mem>>
    %98 = tpu.memref_squeeze %97 : memref<1x!tpu.dma_semaphore, #tpu.memory_space<semaphore_mem>> -> memref<!tpu.dma_semaphore, #tpu.memory_space<semaphore_mem>>
    tpu.enqueue_dma source(%95 : memref<1x16xf32, #tpu.memory_space<any>>) target(%96 : memref<1x16xf32, #tpu.memory_space<vmem>>) target_semaphore(%98 : memref<!tpu.dma_semaphore, #tpu.memory_space<semaphore_mem>>)
    %c7_i32 = arith.constant 7 : i32
    %99 = arith.addi %0, %c7_i32 : i32
    %100 = arith.index_cast %99 : i32 to index
    %101 = memref.load %arg1[%100] : memref<16xi32, #tpu.memory_space<smem>>
    %102 = arith.addi %0, %c7_i32 : i32
    %103 = arith.index_cast %102 : i32 to index
    %104 = memref.load %arg2[%103] : memref<16xi32, #tpu.memory_space<smem>>
    %c0_i32_42 = arith.constant 0 : i32
    %c0_i32_43 = arith.constant 0 : i32
    %105 = tpu.memref_slice %arg4[%101, %c0_i32_43] : memref<50x16xf32, #tpu.memory_space<any>> -> memref<1x16xf32, #tpu.memory_space<any>>
    %c0_i32_44 = arith.constant 0 : i32
    %106 = tpu.memref_slice %arg8[%c7_i32, %c0_i32_44] : memref<8x16xf32, #tpu.memory_space<vmem>> -> memref<1x16xf32, #tpu.memory_space<vmem>>
    %107 = tpu.memref_slice %arg10[%c0_i32_42] : memref<2x!tpu.dma_semaphore, #tpu.memory_space<semaphore_mem>> -> memref<1x!tpu.dma_semaphore, #tpu.memory_space<semaphore_mem>>
    %108 = tpu.memref_squeeze %107 : memref<1x!tpu.dma_semaphore, #tpu.memory_space<semaphore_mem>> -> memref<!tpu.dma_semaphore, #tpu.memory_space<semaphore_mem>>
    tpu.enqueue_dma source(%105 : memref<1x16xf32, #tpu.memory_space<any>>) target(%106 : memref<1x16xf32, #tpu.memory_space<vmem>>) target_semaphore(%108 : memref<!tpu.dma_semaphore, #tpu.memory_space<semaphore_mem>>)
    %c1_i32_45 = arith.constant 1 : i32
    %c0_i32_46 = arith.constant 0 : i32
    %109 = tpu.memref_slice %arg5[%104, %c0_i32_46] : memref<60x16xf32, #tpu.memory_space<any>> -> memref<1x16xf32, #tpu.memory_space<any>>
    %c0_i32_47 = arith.constant 0 : i32
    %110 = tpu.memref_slice %arg9[%c7_i32, %c0_i32_47] : memref<8x16xf32, #tpu.memory_space<vmem>> -> memref<1x16xf32, #tpu.memory_space<vmem>>
    %111 = tpu.memref_slice %arg10[%c1_i32_45] : memref<2x!tpu.dma_semaphore, #tpu.memory_space<semaphore_mem>> -> memref<1x!tpu.dma_semaphore, #tpu.memory_space<semaphore_mem>>
    %112 = tpu.memref_squeeze %111 : memref<1x!tpu.dma_semaphore, #tpu.memory_space<semaphore_mem>> -> memref<!tpu.dma_semaphore, #tpu.memory_space<semaphore_mem>>
    tpu.enqueue_dma source(%109 : memref<1x16xf32, #tpu.memory_space<any>>) target(%110 : memref<1x16xf32, #tpu.memory_space<vmem>>) target_semaphore(%112 : memref<!tpu.dma_semaphore, #tpu.memory_space<semaphore_mem>>)
    %c8_i32_48 = arith.constant 8 : i32
    %c0 = arith.constant 0 : index
    %c0_49 = arith.constant 0 : index
    %113 = vector.load %arg3[%c0, %c0_49] : memref<8x32xf32, #tpu.memory_space<vmem>>, vector<8x32xf32>
    %c32 = arith.constant 32 : index
    %c0_50 = arith.constant 0 : index
    %114 = vector.load %arg6[%c32, %c0_50] : memref<448x128xf32, #tpu.memory_space<vmem>>, vector<32x128xf32>
    %cst = arith.constant dense<0.000000e+00> : vector<8x128xf32>
    %115 = tpu.matmul %113, %114, %cst {dimension_numbers = #tpu.dot_dimension_numbers<[1], [0], [0], [1], [0, 0, 1, 1], [], []>} : vector<8x32xf32>, vector<32x128xf32>, vector<8x128xf32> -> vector<8x128xf32>
    %c128 = arith.constant 128 : index
    %c0_51 = arith.constant 0 : index
    %116 = vector.load %arg6[%c128, %c0_51] : memref<448x128xf32, #tpu.memory_space<vmem>>, vector<1x128xf32>
    %117 = vector.broadcast %116 : vector<1x128xf32> to vector<8x128xf32>
    %118 = arith.addf %115, %117 : vector<8x128xf32>
    %c0_i32_52 = arith.constant 0 : i32
    %119 = tpu.memref_slice %arg10[%c0_i32_52] : memref<2x!tpu.dma_semaphore, #tpu.memory_space<semaphore_mem>> -> memref<1x!tpu.dma_semaphore, #tpu.memory_space<semaphore_mem>>
    %120 = tpu.memref_squeeze %119 : memref<1x!tpu.dma_semaphore, #tpu.memory_space<semaphore_mem>> -> memref<!tpu.dma_semaphore, #tpu.memory_space<semaphore_mem>>
    tpu.wait_dma2 semaphore(%120 : memref<!tpu.dma_semaphore, #tpu.memory_space<semaphore_mem>>) src(%arg8 : memref<8x16xf32, #tpu.memory_space<vmem>>) dst(%arg8 : memref<8x16xf32, #tpu.memory_space<vmem>>)
    %c1_i32_53 = arith.constant 1 : i32
    %121 = tpu.memref_slice %arg10[%c1_i32_53] : memref<2x!tpu.dma_semaphore, #tpu.memory_space<semaphore_mem>> -> memref<1x!tpu.dma_semaphore, #tpu.memory_space<semaphore_mem>>
    %122 = tpu.memref_squeeze %121 : memref<1x!tpu.dma_semaphore, #tpu.memory_space<semaphore_mem>> -> memref<!tpu.dma_semaphore, #tpu.memory_space<semaphore_mem>>
    tpu.wait_dma2 semaphore(%122 : memref<!tpu.dma_semaphore, #tpu.memory_space<semaphore_mem>>) src(%arg9 : memref<8x16xf32, #tpu.memory_space<vmem>>) dst(%arg9 : memref<8x16xf32, #tpu.memory_space<vmem>>)
    %c0_54 = arith.constant 0 : index
    %c0_55 = arith.constant 0 : index
    %123 = vector.load %arg8[%c0_54, %c0_55] : memref<8x16xf32, #tpu.memory_space<vmem>>, vector<8x16xf32>
    %c0_56 = arith.constant 0 : index
    %c0_57 = arith.constant 0 : index
    %124 = vector.load %arg9[%c0_56, %c0_57] : memref<8x16xf32, #tpu.memory_space<vmem>>, vector<8x16xf32>
    %125 = tpu.concatenate %123, %124 in 1 : vector<8x16xf32>, vector<8x16xf32> -> vector<8x32xf32>
    %c0_58 = arith.constant 0 : index
    %c0_59 = arith.constant 0 : index
    %126 = vector.load %arg6[%c0_58, %c0_59] : memref<448x128xf32, #tpu.memory_space<vmem>>, vector<32x128xf32>
    %cst_60 = arith.constant dense<0.000000e+00> : vector<8x128xf32>
    %127 = tpu.matmul %125, %126, %cst_60 {dimension_numbers = #tpu.dot_dimension_numbers<[1], [0], [0], [1], [0, 0, 1, 1], [], []>} : vector<8x32xf32>, vector<32x128xf32>, vector<8x128xf32> -> vector<8x128xf32>
    %128 = arith.addf %118, %127 : vector<8x128xf32>
    %cst_61 = arith.constant 0.000000e+00 : f32
    %129 = vector.broadcast %cst_61 : f32 to vector<8x128xf32>
    %130 = arith.maximumf %128, %129 : vector<8x128xf32>
    %c144 = arith.constant 144 : index
    %c0_62 = arith.constant 0 : index
    %131 = vector.load %arg6[%c144, %c0_62] : memref<448x128xf32, #tpu.memory_space<vmem>>, vector<128x128xf32>
    %cst_63 = arith.constant dense<0.000000e+00> : vector<8x128xf32>
    %132 = tpu.matmul %130, %131, %cst_63 {dimension_numbers = #tpu.dot_dimension_numbers<[1], [0], [0], [1], [0, 0, 1, 1], [], []>} : vector<8x128xf32>, vector<128x128xf32>, vector<8x128xf32> -> vector<8x128xf32>
    %c272 = arith.constant 272 : index
    %c0_64 = arith.constant 0 : index
    %133 = vector.load %arg6[%c272, %c0_64] : memref<448x128xf32, #tpu.memory_space<vmem>>, vector<1x128xf32>
    %134 = vector.broadcast %133 : vector<1x128xf32> to vector<8x128xf32>
    %135 = arith.addf %132, %134 : vector<8x128xf32>
    %cst_65 = arith.constant 0.000000e+00 : f32
    %136 = vector.broadcast %cst_65 : f32 to vector<8x128xf32>
    %137 = arith.maximumf %135, %136 : vector<8x128xf32>
    %c288 = arith.constant 288 : index
    %c0_66 = arith.constant 0 : index
    %138 = vector.load %arg6[%c288, %c0_66] : memref<448x128xf32, #tpu.memory_space<vmem>>, vector<128x128xf32>
    %cst_67 = arith.constant dense<0.000000e+00> : vector<8x128xf32>
    %139 = tpu.matmul %137, %138, %cst_67 {dimension_numbers = #tpu.dot_dimension_numbers<[1], [0], [0], [1], [0, 0, 1, 1], [], []>} : vector<8x128xf32>, vector<128x128xf32>, vector<8x128xf32> -> vector<8x128xf32>
    %c416 = arith.constant 416 : index
    %c0_68 = arith.constant 0 : index
    %140 = vector.load %arg6[%c416, %c0_68] : memref<448x128xf32, #tpu.memory_space<vmem>>, vector<1x128xf32>
    %141 = vector.broadcast %140 : vector<1x128xf32> to vector<8x128xf32>
    %142 = arith.addf %139, %141 : vector<8x128xf32>
    %cst_69 = arith.constant 0.000000e+00 : f32
    %143 = vector.broadcast %cst_69 : f32 to vector<8x128xf32>
    %144 = arith.maximumf %142, %143 : vector<8x128xf32>
    %c432 = arith.constant 432 : index
    %c0_70 = arith.constant 0 : index
    %145 = vector.load %arg6[%c432, %c0_70] : memref<448x128xf32, #tpu.memory_space<vmem>>, vector<1x128xf32>
    %c440 = arith.constant 440 : index
    %c0_71 = arith.constant 0 : index
    %146 = vector.load %arg6[%c440, %c0_71] : memref<448x128xf32, #tpu.memory_space<vmem>>, vector<1x1xf32>
    %147 = vector.broadcast %145 : vector<1x128xf32> to vector<8x128xf32>
    %148 = arith.mulf %144, %147 : vector<8x128xf32>
    %cst_72 = arith.constant dense<0.000000e+00> : vector<8xf32>
    %149 = vector.multi_reduction <add>, %148, %cst_72 [1] : vector<8x128xf32> to vector<8xf32>
    %150 = vector.shape_cast %149 : vector<8xf32> to vector<1x8xf32>
    %151 = vector.broadcast %146 : vector<1x1xf32> to vector<1x8xf32>
    %152 = arith.addf %150, %151 : vector<1x8xf32>
    %153 = vector.shape_cast %152 : vector<1x8xf32> to vector<1x8xf32>
    %154 = vector.broadcast %153 : vector<1x8xf32> to vector<8x8xf32>
    %c0_73 = arith.constant 0 : index
    %c0_74 = arith.constant 0 : index
    %155 = vector.load %arg7[%c0_73, %c0_74] : memref<8x8xf32, #tpu.memory_space<vmem>>, vector<8x8xf32>
    tpu.vector_store %arg7[%c0_73, %c0_74], %154 {strides = array<i32>} : memref<8x8xf32, #tpu.memory_space<vmem>>, vector<8x8xf32>,
    return
  }
  func.func @transform_0(%arg0: i32, %arg1: memref<16xi32, #tpu.memory_space<smem>>, %arg2: memref<16xi32, #tpu.memory_space<smem>>) -> (i32, i32) {
    %c0_i32 = arith.constant 0 : i32
    %c0_i32_0 = arith.constant 0 : i32
    return %arg0, %c0_i32 : i32, i32
  }
  func.func @transform_3(%arg0: i32, %arg1: memref<16xi32, #tpu.memory_space<smem>>, %arg2: memref<16xi32, #tpu.memory_space<smem>>) -> (i32, i32) {
    %c0_i32 = arith.constant 0 : i32
    %c0_i32_0 = arith.constant 0 : i32
    %c0_i32_1 = arith.constant 0 : i32
    return %c0_i32, %c0_i32_0 : i32, i32
  }
  func.func @transform_4(%arg0: i32, %arg1: memref<16xi32, #tpu.memory_space<smem>>, %arg2: memref<16xi32, #tpu.memory_space<smem>>) -> (i32, i32) {
    %c0_i32 = arith.constant 0 : i32
    %c0_i32_0 = arith.constant 0 : i32
    return %arg0, %c0_i32 : i32, i32
  }
}

</mosaic_0001>

<bundles_post_ra>
// kernel: tpu_custom_call.1
= control target key start
LH: loop header
LB: loop body
LE: loop exit
PB: predicated region body
PF: predicated region fallthrough
CT: control target
= control target key end

     0   :  { %s2083_s0 = inlined_call_operand.vmem [shape: s32[16], index: 0, kind: input, shape index: {}]   ;;  %s2084_s2 = inlined_call_operand.vmem [shape: f32[16,32], index: 2, kind: input, shape index: {}]   ;;  %s2085_s3 = inlined_call_operand.vmem [shape: f32[50,16], index: 3, kind: input, shape index: {}]   ;;  %s2086_s4 = inlined_call_operand.vmem [shape: f32[60,16], index: 4, kind: input, shape index: {}]   ;;  %s2087_s5 = inlined_call_operand.hbm [shape: f32[448,128], index: 5, kind: input, shape index: {}]   ;;  %s2088_s6 = inlined_call_operand.vmem [shape: f32[16,8], index: 6, kind: output, shape index: {}]   ;;  %s2089_s1 = inlined_call_operand.vmem [shape: s32[16], index: 1, kind: input, shape index: {}]  }
   0x1   :  { %s11_s23 = sshll.u32 %s2083_s0, 4  ;;  %s15_s26 = sshll.u32 %s2089_s1, 4  ;;  %s12_s23 = int_to_ptr.vmem [resolvable:$true] %s11_s23  ;;  %s16_s26 = int_to_ptr.vmem [resolvable:$true] %s15_s26 }
   0x2   :  { %s1816_s27 = scalar_lea.vmem %s12_s23, 16  ;;  %p1821_p1 = scmp.lt.s32.totalorder %s12_s23, %s12_s23 }
   0x3   :  { %p1817_p0 = scmp.ne.s32.totalorder %s12_s23, %s1816_s27  ;;  %p1822_p2 = scmp.lt.s32.totalorder %s1816_s27, %s1816_s27 }
   0x5   :  { %p1823_p3 = por %p1822_p2, %p1821_p1 }
   0x7   :  { %p1824_p4 = pnand %p1823_p3, %p1817_p0 }
   0x9   :  { %1827 = shalt.err (!%p1824_p4)  }
   0xa   :  { %s1884_s28 = smov [#allocation6]   ;;  %s1828_s29 = scalar_lea.vmem %s16_s26, 16 }
   0xb   :  { %14 = dma.vmem_to_smem %s12_s23, 16, %s1884_s28, [#allocation5] }
   0xc   :  { %p1829_p5 = scmp.ne.s32.totalorder %s16_s26, %s1828_s29  ;;  %p1833_p6 = scmp.lt.s32.totalorder %s16_s26, %s16_s26 }
   0xd   :  { %p1834_p7 = scmp.lt.s32.totalorder %s1828_s29, %s1828_s29 }
   0xf   :  { %p1835_p8 = por %p1834_p7, %p1833_p6 }
  0x11   :  { %p1836_p9 = pnand %p1835_p8, %p1829_p5 }
  0x13   :  { %1839 = shalt.err (!%p1836_p9)  }
  0x14   :  { %s1885_s0 = smov [#allocation7]  }
  0x15   :  { %18 = dma.vmem_to_smem %s16_s26, 16, %s1885_s0, [#allocation5] }
  0x16   :  { %1870 = dma.done.wait [#allocation5], 32 }
  0x17   :  { %1871 = vsyncadd [#allocation5], 4294967264 }
  0x18   :  { %20 = sfence }
  0x19   :  { %21 = vsyncpa [#allocation9], 0  ;;  %s1934_s1 = smov 0  }
  0x1a LB: > { %s1631_s30 = sadd.s32 4294967295, %s1882_s1   ;;  %p1633_p10 = scmp.ge.s32.totalorder %s1882_s1, 1  ;;  %s1882_s1 = sphi %s1934_s1, %s27_s1  }
  0x1b   : > { %p105_p11 = scmp.lt.s32.totalorder %s1882_s1, 3  ;;  %s1886_s7 = smov [#allocation8]  }
  0x1c   : > { %s117_s8 = sshll.u32 %s1886_s7, 4  ;;  %p1795_p13 = scmp.eq.s32.totalorder %s1631_s30, 0  ;;  %s118_s8 = int_to_ptr.vmem [resolvable:$true] %s117_s8 }
  0x1d   : > { %p1942_p12 = pnand %p1633_p10, %p105_p11  ;;  %s1851_s10 = scalar_lea.vmem %s118_s8, 7168 }
  0x1e   : > { %p1852_p3 = scmp.ne.s32.totalorder %s118_s8, %s1851_s10  ;;  %p1859_p6 = scmp.lt.s32.totalorder %s118_s8, %s118_s8 }
  0x1f   : > { %p1791_p0 = pneg %p1942_p12  ;;  %p1860_p7 = scmp.lt.s32.totalorder %s1851_s10, %s1851_s10 }
  0x21   : > { %p1792_p1 = pnand %p1795_p13, %p1791_p0  ;;  %p1861_p8 = por %p1860_p7, %p1859_p6 }
  0x23   : > { %p1842_p2 = pneg %p1792_p1 }
  0x25   : > { %p1854_p4 = pnand %p1852_p3, %p1842_p2 }
  0x27   : > { %p1855_p5 = pneg %p1854_p4 }
  0x29   : > { %p1862_p9 = pnand %p1861_p8, %p1855_p5 }
  0x2b   : > { %1865 = shalt.err (!%p1862_p9)
}
  0x2c   : > { %s1887_s11 = smov 128   ;;  %s1888_s12 = smov 8  }
  0x2d   : > { %1794 = dma.hbm_to_vmem [thread:$0]  (!%p1792_p1), %s2087_s5, 7168, %s118_s8, [#allocation9], %s1887_s11, %s1887_s11, %s1888_s12  }
  0x2e   : > { %140 = sbr.rel (%p1942_p12) target bundleno = 1342 (0x53e), region = 28 }
  0x33   : > { %1873 = dma.done.wait (%p1795_p13), [#allocation9], 7168  }
  0x34   : > { %1875 = vsyncadd (%p1795_p13), [#allocation9], 4294960128  ;;  %s1956_s15 = sshll.u32 %s1631_s30, 3  ;;  %p160_p10 = scmp.lt.s32.totalorder %s1631_s30, 1 }
  0x35   : > { %s170_s16 = sld [smem:[#allocation7 + %s1956_s15]] }
  0x36   : > { %s2092_s30 = smov (!%p160_p10, %s1631_s30), 1  ;;  %s169_s17 = sld [smem:[#allocation6 + %s1956_s15]] }
  0x37   : > { %s1638_s18 = sshll.u32 %s2092_s30, 3 }
  0x38   : > { %s1963_s21 = scalar_lea.vmem %s2084_s2, %s1638_s18  ;;  %s1968_s24 = scalar_lea.vmem %s2088_s6, %s1638_s18 }
  0x3c   : > { %s171_s27 = scalar_lea.vmem %s2085_s3, %s169_s17 }
  0x3d   : > { %v190_v0 = vld [vmem:[%s171_s27] sm:$0x1] }
  0x3e   : > { %191 = vst [vmem:[#allocation2] sm:$0x1] %v190_v0 }
  0x3f   : > { %217 = vsyncadd [#allocation4], 16  ;;  %s218_s0 = scalar_lea.vmem %s2086_s4, %s170_s16 }
  0x40   : > { %v238_v1 = vld [vmem:[%s218_s0] sm:$0x1] }
  0x41   : > { %239 = vst [vmem:[#allocation3] sm:$0x1] %v238_v1 }
  0x42   : > { %265 = vsyncadd [#allocation4 + $0x1], 16  ;;  %s266_s30 = sadd.s32 1, %s1956_s15 }
  0x43   : > { %s267_s7 = sld [smem:[#allocation6 + %s266_s30]] }
  0x44   : > { %s268_s8 = sld [smem:[#allocation7 + %s266_s30]] }
  0x49   : > { %s269_s11 = scalar_lea.vmem %s2085_s3, %s267_s7 }
  0x4a   : > { %v289_v2 = vld [vmem:[%s269_s11] sm:$0x1] }
  0x4b   : > { %290 = vst [vmem:[#allocation2 + $0x1] sm:$0x1] %v289_v2 }
  0x4c   : > { %316 = vsyncadd [#allocation4], 16  ;;  %s317_s14 = scalar_lea.vmem %s2086_s4, %s268_s8 }
  0x4d   : > { %v337_v3 = vld [vmem:[%s317_s14] sm:$0x1] }
  0x4e   : > { %338 = vst [vmem:[#allocation3 + $0x1] sm:$0x1] %v337_v3 }
  0x4f   : > { %364 = vsyncadd [#allocation4 + $0x1], 16  ;;  %s365_s16 = sadd.s32 2, %s1956_s15 }
  0x50   : > { %s366_s17 = sld [smem:[#allocation6 + %s365_s16]] }
  0x51   : > { %s367_s18 = sld [smem:[#allocation7 + %s365_s16]] }
  0x56   : > { %s368_s22 = scalar_lea.vmem %s2085_s3, %s366_s17 }
  0x57   : > { %v388_v4 = vld [vmem:[%s368_s22] sm:$0x1] }
  0x58   : > { %389 = vst [vmem:[#allocation2 + $0x2] sm:$0x1] %v388_v4 }
  0x59   : > { %415 = vsyncadd [#allocation4], 16  ;;  %s416_s26 = scalar_lea.vmem %s2086_s4, %s367_s18 }
  0x5a   : > { %v436_v5 = vld [vmem:[%s416_s26] sm:$0x1] }
  0x5b   : > { %437 = vst [vmem:[#allocation3 + $0x2] sm:$0x1] %v436_v5 }
  0x5c   : > { %463 = vsyncadd [#allocation4 + $0x1], 16  ;;  %s464_s27 = sadd.s32 3, %s1956_s15 }
  0x5d   : > { %s465_s28 = sld [smem:[#allocation6 + %s464_s27]] }
  0x5e   : > { %s466_s29 = sld [smem:[#allocation7 + %s464_s27]] }
  0x63   : > { %s467_s7 = scalar_lea.vmem %s2085_s3, %s465_s28 }
  0x64   : > { %v487_v6 = vld [vmem:[%s467_s7] sm:$0x1] }
  0x65   : > { %488 = vst [vmem:[#allocation2 + $0x3] sm:$0x1] %v487_v6 }
  0x66   : > { %514 = vsyncadd [#allocation4], 16  ;;  %s515_s10 = scalar_lea.vmem %s2086_s4, %s466_s29 }
  0x67   : > { %v535_v7 = vld [vmem:[%s515_s10] sm:$0x1] }
  0x68   : > { %536 = vst [vmem:[#allocation3 + $0x3] sm:$0x1] %v535_v7 }
  0x69   : > { %562 = vsyncadd [#allocation4 + $0x1], 16  ;;  %s563_s11 = sadd.s32 4, %s1956_s15 }
  0x6a   : > { %s564_s12 = sld [smem:[#allocation6 + %s563_s11]] }
  0x6b   : > { %s565_s13 = sld [smem:[#allocation7 + %s563_s11]] }
  0x70   : > { %s566_s17 = scalar_lea.vmem %s2085_s3, %s564_s12 }
  0x71   : > { %v586_v8 = vld [vmem:[%s566_s17] sm:$0x1] }
  0x72   : > { %587 = vst [vmem:[#allocation2 + $0x4] sm:$0x1] %v586_v8 }
  0x73   : > { %613 = vsyncadd [#allocation4], 16  ;;  %s614_s20 = scalar_lea.vmem %s2086_s4, %s565_s13 }
  0x74   : > { %v634_v9 = vld [vmem:[%s614_s20] sm:$0x1] }
  0x75   : > { %635 = vst [vmem:[#allocation3 + $0x4] sm:$0x1] %v634_v9 }
  0x76   : > { %661 = vsyncadd [#allocation4 + $0x1], 16  ;;  %s662_s22 = sadd.s32 5, %s1956_s15 }
  0x77   : > { %s663_s23 = sld [smem:[#allocation6 + %s662_s22]] }
  0x78   : > { %s664_s25 = sld [smem:[#allocation7 + %s662_s22]] }
  0x7d   : > { %s665_s28 = scalar_lea.vmem %s2085_s3, %s663_s23 }
  0x7e   : > { %v685_v10 = vld [vmem:[%s665_s28] sm:$0x1] }
  0x7f   : > { %686 = vst [vmem:[#allocation2 + $0x5] sm:$0x1] %v685_v10 }
  0x80   : > { %712 = vsyncadd [#allocation4], 16  ;;  %s713_s30 = scalar_lea.vmem %s2086_s4, %s664_s25 }
  0x81   : > { %v733_v11 = vld [vmem:[%s713_s30] sm:$0x1] }
  0x82   : > { %734 = vst [vmem:[#allocation3 + $0x5] sm:$0x1] %v733_v11 }
  0x83   : > { %760 = vsyncadd [#allocation4 + $0x1], 16  ;;  %s761_s7 = sadd.s32 6, %s1956_s15 }
  0x84   : > { %s762_s8 = sld [smem:[#allocation6 + %s761_s7]] }
  0x85   : > { %s763_s9 = sld [smem:[#allocation7 + %s761_s7]] }
  0x8a   : > { %s764_s12 = scalar_lea.vmem %s2085_s3, %s762_s8 }
  0x8b   : > { %v784_v12 = vld [vmem:[%s764_s12] sm:$0x1] }
  0x8c   : > { %785 = vst [vmem:[#allocation2 + $0x6] sm:$0x1] %v784_v12 }
  0x8d   : > { %811 = vsyncadd [#allocation4], 16  ;;  %s812_s16 = scalar_lea.vmem %s2086_s4, %s763_s9 }
  0x8e   : > { %v832_v13 = vld [vmem:[%s812_s16] sm:$0x1] }
  0x8f   : > { %833 = vst [vmem:[#allocation3 + $0x6] sm:$0x1] %v832_v13 }
  0x90   : > { %859 = vsyncadd [#allocation4 + $0x1], 16  ;;  %s860_s17 = sadd.s32 7, %s1956_s15 }
  0x91   : > { %s861_s18 = sld [smem:[#allocation6 + %s860_s17]] }
  0x92   : > { %s862_s19 = sld [smem:[#allocation7 + %s860_s17]] }
  0x97   : > { %s863_s23 = scalar_lea.vmem %s2085_s3, %s861_s18 }
  0x98   : > { %v883_v14 = vld [vmem:[%s863_s23] sm:$0x1] }
  0x99   : > { %884 = vst [vmem:[#allocation2 + $0x7] sm:$0x1] %v883_v14 }
  0x9a   : > { %910 = vsyncadd [#allocation4], 16  ;;  %s911_s27 = scalar_lea.vmem %s2086_s4, %s862_s19 }
  0x9b   : > { %v931_v15 = vld [vmem:[%s911_s27] sm:$0x1] }
  0x9c   : > { %932 = vst [vmem:[#allocation3 + $0x7] sm:$0x1] %v931_v15 }
  0x9d   : > { %958 = vsyncadd [#allocation4 + $0x1], 16  ;;  %v963_v16 = vld [vmem:[#allocation8 + $0x38] sm:$0xff]  ;;  %v1889_v17 = vmov 0.0   ;;  %v962_v18 = vld [vmem:[#allocation8 + $0x30] sm:$0xff]  ;;  %vm1890_vm0 = vmmov 0  }
  0x9e   : > { %1695 = vmatprep.subr.mxu0 %v1889_v17  ;;  %1703 = vmatprep.mubr.msk.f32.mxu0 %vm1890_vm0, %v1889_v17  ;;  %v961_v19 = vld [vmem:[#allocation8 + $0x28] sm:$0xff]  ;;  %v960_v20 = vld [vmem:[#allocation8 + $0x20] sm:$0xff]  ;;  %v959_v21 = vld [vmem:[%s1963_s21] sm:$0xff]  ;;  %vm969_vm1 = vcmask 261120  }
  0x9f   : > { %1696 = vmatpush3.msra.mxu0 %v963_v16  ;;  %v1641_v22 = vld [vmem:[#allocation8 + $0x80] ss:$0 sm:$0xff] }
  0xa0   : > { %1697 = vmatprep.subr.mxu0 %v1889_v17 }
  0xa1   : > { %1698 = vmatpush3.msra.mxu0 %v962_v18 }
  0xa2   : > { %1699 = vmatprep.subr.mxu0 %v1889_v17 }
  0xa3   : > { %1700 = vmatpush3.msra.mxu0 %v961_v19 }
  0xa4   : > { %1701 = vmatprep.subr.mxu0 %v1889_v17 }
  0xa5   : > { %1702 = vmatpush3.msra.mxu0 %v960_v20 }
  0xa6   : > { %1704 = vmatmul.mubr.msk.f32.vlgmr.msra.gmra.mxu0 %vm969_vm1, %v959_v21 }
 0x166   : > { %v1039_v23 = vpop.f32.mrf.mxu0 }
 0x167   : > { %v2033_v24 = vadd.f32 %v1641_v22, %v1039_v23 }
 0x168   : > { %v1705_v25 = vpop.f32.mrf.mxu0 }
 0x169   : > { %1876 = dma.done.wait [#allocation4], 128 }
 0x16a   : > { %1877 = vsyncadd [#allocation4], 4294967168 }
 0x16b   : > { %1878 = dma.done.wait [#allocation4 + $0x1], 128 }
 0x16c   : > { %1879 = vsyncadd [#allocation4 + $0x1], 4294967168  ;;  %1706 = vmatprep.subr.mxu1 %v1889_v17  ;;  %1714 = vmatprep.mubr.msk.f32.mxu1 %vm1890_vm0, %v1889_v17  ;;  %v1049_v26 = vld [vmem:[#allocation3] sm:$0xff]  ;;  %v1058_v28 = vld [vmem:[#allocation8 + $0x10] sm:$0xff]  ;;  %s1891_s15 = smov 16   ;;  %vm1054_vm2 = vcmask 130048   ;;  %v1332_v20 = vlaneseq }
 0x16d   : > { %1717 = vmatprep.subr.mxu0 %v1889_v17  ;;  %1749 = vmatprep.mubr.msk.f32.mxu0 %vm1890_vm0, %v1889_v17  ;;  %v1059_v27 = vld [vmem:[#allocation8 + $0x18] sm:$0xff]  ;;  %v1057_v29 = vld [vmem:[#allocation8 + $0x8] sm:$0xff]  ;;  %v1149_v31 = vld [vmem:[#allocation8 + $0x100] sm:$0xff]  ;;  %v1892_v12 = vmov 0   ;;  %vm1361_vm3 = vcmask 64512  }
 0x16e   : > { %1051 = vrot.lane.b32.xlu0 %v1049_v26, %s1891_s15  ;;  %1707 = vmatpush3.msra.mxu1 %v1059_v27  ;;  %v1150_v30 = vld [vmem:[#allocation8 + $0x108] sm:$0xff]  ;;  %v1056_v32 = vld [vmem:[#allocation8] sm:$0xff]  ;;  %v1148_v33 = vld [vmem:[#allocation8 + $0xf8] sm:$0xff]  ;;  %v1333_v21 = vshrl.u32 %v1332_v20, 7  ;;  %v1343_v27 = vand.u32 127, %v1332_v20 }
 0x16f   : > { %1708 = vmatprep.subr.mxu1 %v1889_v17  ;;  %1718 = vmatpush3.msra.mxu0 %v1150_v30  ;;  %v1147_v34 = vld [vmem:[#allocation8 + $0xf0] sm:$0xff]  ;;  %v1146_v35 = vld [vmem:[#allocation8 + $0xe8] sm:$0xff]  ;;  %v1145_v36 = vld [vmem:[#allocation8 + $0xe0] sm:$0xff] }
 0x170   : > { %1709 = vmatpush3.msra.mxu1 %v1058_v28  ;;  %1719 = vmatprep.subr.mxu0 %v1889_v17  ;;  %v1144_v37 = vld [vmem:[#allocation8 + $0xd8] sm:$0xff]  ;;  %v1143_v38 = vld [vmem:[#allocation8 + $0xd0] sm:$0xff]  ;;  %v1142_v39 = vld [vmem:[#allocation8 + $0xc8] sm:$0xff]  ;;  %v1334_v22 = vsub.s32 0, %v1333_v21  ;;  %v1346_v28 = vsub.s32 %v1343_v27, %v1333_v21 }
 0x171   : > { %1710 = vmatprep.subr.mxu1 %v1889_v17  ;;  %1720 = vmatpush3.msra.mxu0 %v1149_v31  ;;  %v1141_v40 = vld [vmem:[#allocation8 + $0xc0] sm:$0xff]  ;;  %v1140_v41 = vld [vmem:[#allocation8 + $0xb8] sm:$0xff]  ;;  %v1139_v42 = vld [vmem:[#allocation8 + $0xb0] sm:$0xff] }
 0x172   : > { %1711 = vmatpush3.msra.mxu1 %v1057_v29  ;;  %1721 = vmatprep.subr.mxu0 %v1889_v17  ;;  %v1138_v43 = vld [vmem:[#allocation8 + $0xa8] sm:$0xff]  ;;  %v1048_v44 = vld [vmem:[#allocation2] sm:$0xff]  ;;  %v1137_v47 = vld [vmem:[#allocation8 + $0xa0] sm:$0xff] }
 0x173   : > { %1712 = vmatprep.subr.mxu1 %v1889_v17  ;;  %1722 = vmatpush3.msra.mxu0 %v1148_v33  ;;  %v1136_v48 = vld [vmem:[#allocation8 + $0x98] sm:$0xff]  ;;  %v1135_v49 = vld [vmem:[#allocation8 + $0x90] sm:$0xff]  ;;  %v1240_v52 = vld [vmem:[#allocation8 + $0x188] sm:$0xff] }
 0x174   : > { %1713 = vmatpush3.msra.mxu1 %v1056_v32  ;;  %1723 = vmatprep.subr.mxu0 %v1889_v17  ;;  %v1242_v50 = vld [vmem:[#allocation8 + $0x198] sm:$0xff]  ;;  %v1241_v51 = vld [vmem:[#allocation8 + $0x190] sm:$0xff]  ;;  %v1239_v53 = vld [vmem:[#allocation8 + $0x180] sm:$0xff] }
 0x175   : > { %1752 = vmatprep.subr.mxu1 %v1889_v17  ;;  %1724 = vmatpush3.msra.mxu0 %v1147_v34  ;;  %v1238_v54 = vld [vmem:[#allocation8 + $0x178] sm:$0xff]  ;;  %v1237_v55 = vld [vmem:[#allocation8 + $0x170] sm:$0xff]  ;;  %v1236_v56 = vld [vmem:[#allocation8 + $0x168] sm:$0xff] }
 0x176   : > { %1725 = vmatprep.subr.mxu0 %v1889_v17  ;;  %v1235_v57 = vld [vmem:[#allocation8 + $0x160] sm:$0xff]  ;;  %v1234_v58 = vld [vmem:[#allocation8 + $0x158] sm:$0xff]  ;;  %v1233_v59 = vld [vmem:[#allocation8 + $0x150] sm:$0xff]  ;;  %1814 = vset.pattern.permute.xlu1 %v1892_v12 }
 0x177   : > { %1726 = vmatpush3.msra.mxu0 %v1146_v35  ;;  %v1232_v60 = vld [vmem:[#allocation8 + $0x148] sm:$0xff]  ;;  %v1231_v61 = vld [vmem:[#allocation8 + $0x140] sm:$0xff]  ;;  %v1230_v62 = vld [vmem:[#allocation8 + $0x138] sm:$0xff]  ;;  %1815 = vset.pattern.permute.xlu0 %v1892_v12 }
 0x178   : > { %1727 = vmatprep.subr.mxu0 %v1889_v17  ;;  %v1229_v3 = vld [vmem:[#allocation8 + $0x130] sm:$0xff]  ;;  %v1228_v4 = vld [vmem:[#allocation8 + $0x128] sm:$0xff]  ;;  %v1227_v5 = vld [vmem:[#allocation8 + $0x120] sm:$0xff] }
 0x179   : > { %1728 = vmatpush3.msra.mxu0 %v1145_v36  ;;  %v1644_v6 = vld [vmem:[#allocation8 + $0x110] ss:$0 sm:$0xff]  ;;  %v1320_v11 = vld [vmem:[#allocation8 + $0x1b8] sm:$0x1]  ;;  %v1645_v13 = vld [vmem:[#allocation8 + $0x1a0] ss:$0 sm:$0xff] }
 0x17a   : > { %1729 = vmatprep.subr.mxu0 %v1889_v17  ;;  %1330 = vperm.xlu1 %1814, %v1320_v11   ;;  %v1646_v18 = vld [vmem:[#allocation8 + $0x1b0] ss:$0 sm:$0xff] }
 0x17b   : > { %1730 = vmatpush3.msra.mxu0 %v1144_v37 }
 0x17c   : > { %1731 = vmatprep.subr.mxu0 %v1889_v17 }
 0x17d   : > { %1732 = vmatpush3.msra.mxu0 %v1143_v38 }
 0x17e   : > { %1733 = vmatprep.subr.mxu0 %v1889_v17 }
 0x17f   : > { %1734 = vmatpush3.msra.mxu0 %v1142_v39 }
 0x180   : > { %1735 = vmatprep.subr.mxu0 %v1889_v17 }
 0x181   : > { %1736 = vmatpush3.msra.mxu0 %v1141_v40 }
 0x182   : > { %1737 = vmatprep.subr.mxu0 %v1889_v17 }
 0x183   : > { %1738 = vmatpush3.msra.mxu0 %v1140_v41 }
 0x184   : > { %1739 = vmatprep.subr.mxu0 %v1889_v17 }
 0x185   : > { %1740 = vmatpush3.msra.mxu0 %v1139_v42 }
 0x186   : > { %1741 = vmatprep.subr.mxu0 %v1889_v17 }
 0x187   : > { %1742 = vmatpush3.msra.mxu0 %v1138_v43 }
 0x188   : > { %1743 = vmatprep.subr.mxu0 %v1889_v17 }
 0x189   : > { %1744 = vmatpush3.msra.mxu0 %v1137_v47 }
 0x18a   : > { %1745 = vmatprep.subr.mxu0 %v1889_v17 }
 0x18b   : > { %1746 = vmatpush3.msra.mxu0 %v1136_v48 }
 0x18c   : > { %1747 = vmatprep.subr.mxu0 %v1889_v17 }
 0x18d   : > { %1748 = vmatpush3.msra.mxu0 %v1135_v49 }
 0x1e0   : > { %v1052_v45 = vpop.permute.xlu0 %1051 }
 0x1e1   : > { %v1055_v46 = vsel %vm1054_vm2, %v1048_v44, %v1052_v45 }
 0x1e2   : > { %1715 = vmatmul.mubr.msk.f32.vlgmr.msra.gmra.mxu1 %vm969_vm1, %v1055_v46 }
 0x1e3   : > { %1784 = vmatprep.mubr.msk.f32.mxu1 %vm1890_vm0, %v1889_v17  ;;  %1753 = vmatpush3.msra.mxu1 %v1242_v50 }
 0x1e4   : > { %1754 = vmatprep.subr.mxu1 %v1889_v17 }
 0x1e5   : > { %1755 = vmatpush3.msra.mxu1 %v1241_v51 }
 0x1e6   : > { %1756 = vmatprep.subr.mxu1 %v1889_v17 }
 0x1e7   : > { %1757 = vmatpush3.msra.mxu1 %v1240_v52 }
 0x1e8   : > { %1758 = vmatprep.subr.mxu1 %v1889_v17 }
 0x1e9   : > { %1759 = vmatpush3.msra.mxu1 %v1239_v53 }
 0x1ea   : > { %1760 = vmatprep.subr.mxu1 %v1889_v17 }
 0x1eb   : > { %1761 = vmatpush3.msra.mxu1 %v1238_v54 }
 0x1ec   : > { %1762 = vmatprep.subr.mxu1 %v1889_v17 }
 0x1ed   : > { %1763 = vmatpush3.msra.mxu1 %v1237_v55 }
 0x1ee   : > { %1764 = vmatprep.subr.mxu1 %v1889_v17 }
 0x1ef   : > { %1765 = vmatpush3.msra.mxu1 %v1236_v56 }
 0x1f0   : > { %1766 = vmatprep.subr.mxu1 %v1889_v17 }
 0x1f1   : > { %1767 = vmatpush3.msra.mxu1 %v1235_v57 }
 0x1f2   : > { %1768 = vmatprep.subr.mxu1 %v1889_v17 }
 0x1f3   : > { %1769 = vmatpush3.msra.mxu1 %v1234_v58 }
 0x1f4   : > { %1770 = vmatprep.subr.mxu1 %v1889_v17 }
 0x1f5   : > { %1771 = vmatpush3.msra.mxu1 %v1233_v59  ;;  %v1331_v23 = vpop.permute.xlu1 %1330 }
 0x1f6   : > { %1772 = vmatprep.subr.mxu1 %v1889_v17 }
 0x1f7   : > { %1773 = vmatpush3.msra.mxu1 %v1232_v60 }
 0x1f8   : > { %1774 = vmatprep.subr.mxu1 %v1889_v17 }
 0x1f9   : > { %1775 = vmatpush3.msra.mxu1 %v1231_v61 }
 0x1fa   : > { %1776 = vmatprep.subr.mxu1 %v1889_v17 }
 0x1fb   : > { %1777 = vmatpush3.msra.mxu1 %v1230_v62 }
 0x1fc   : > { %1778 = vmatprep.subr.mxu1 %v1889_v17 }
 0x1fd   : > { %1779 = vmatpush3.msra.mxu1 %v1229_v3 }
 0x1fe   : > { %1780 = vmatprep.subr.mxu1 %v1889_v17 }
 0x1ff   : > { %1781 = vmatpush3.msra.mxu1 %v1228_v4 }
 0x200   : > { %1782 = vmatprep.subr.mxu1 %v1889_v17 }
 0x201   : > { %1783 = vmatpush3.msra.mxu1 %v1227_v5 }
 0x2a2   : > { %v1129_v63 = vpop.f32.mrf.mxu1 }
 0x2a3   : > { %v1133_v0 = vadd.f32 %v1129_v63, %v2033_v24  ;;  %v1335_v24 = vrot.slane %v1331_v23, %v1334_v22 }
 0x2a4   : > { %v1716_v1 = vpop.f32.mrf.mxu1 }
 0x2a5   : > { %v1134_v2 = vmax.f32 %v1133_v0, 0.0 }
 0x2a7   : > { %1750 = vmatmul.mubr.f32.vlgmr.msra.gmra.mxu0 %v1134_v2 }
 0x367   : > { %v1222_v7 = vpop.f32.mrf.mxu0 }
 0x368   : > { %v1223_v8 = vadd.f32 %v1644_v6, %v1222_v7 }
 0x369   : > { %v1751_v9 = vpop.f32.mrf.mxu0 }
 0x36a   : > { %v1226_v10 = vmax.f32 %v1223_v8, 0.0 }
 0x36c   : > { %1785 = vmatmul.mubr.f32.vlgmr.msra.gmra.mxu1 %v1226_v10 }
 0x42c   : > { %v1314_v14 = vpop.f32.mrf.mxu1 }
 0x42d   : > { %v1315_v15 = vadd.f32 %v1645_v13, %v1314_v14 }
 0x42e   : > { %v1786_v16 = vpop.f32.mrf.mxu1 }
 0x42f   : > { %v1318_v19 = vmax.f32 %v1315_v15, 0.0 }
 0x431   : > { %v1325_v17 = vmul.f32 %v1646_v18, %v1318_v19 }
 0x433   : > { %1326 = vadd.xlane.f32.xlu0 %v1325_v17 }
 0x4bc   : > { %v1327_v25 = vpop.xlane.xlu0 %1326 }
 0x4bd   : > { %v1337_v26 = vadd.f32 %v1335_v24, %v1327_v25 }
 0x4bf   : > { %1340 = vperm.xlu1 %1814, %v1337_v26  }
 0x53a   : > { %v1341_v29 = vpop.permute.xlu1 %1340 }
 0x53b   : > { %v1347_v30 = vrot.slane %v1341_v29, %v1346_v28 }
 0x53d   : > { %1362 = vst.msk [vmem:[%s1968_s24] sm:$0xff] %vm1361_vm3, %v1347_v30 }
 0x53e PF: > { %s27_s1 = sadd.s32 1, %s1882_s1  }
 0x53f   : > { %p24_p11 = scmp.ge.s32.totalorder %s27_s1, 4  }
 0x541   :  { %26 = sbr.rel (!%p24_p11) target bundleno = 26 (0x1a), region = 735 }
 0x546   :  { %1382 = vsyncpa [#allocation9], 1 }
 0x547   :  { %1384 = vsyncpa [#allocation9 + $0x1], 1 }
 0x548   :  { %1385 = vsyncmov [#allocation4] }
 0x54b   :  { %s1386_s21 = vpop.sfrf %1385 }
 0x54c   :  { %p1649_p12 = scmp.ne.s32.totalorder %s1386_s21, 0 }
 0x54e   :  { %1390 = shalt.err (%p1649_p12)  }
 0x54f   :  { %1392 = vsyncmov [#allocation4 + $0x1] }
 0x552   :  { %s1393_s28 = vpop.sfrf %1392 }
 0x553   :  { %p1650_p13 = scmp.ne.s32.totalorder %s1393_s28, 0 }
 0x555   :  { %1397 = shalt.err (%p1650_p13)  }

</bundles_post_ra>
